<compile_context>
chip_gen: v7x
topology: tpu7x:2x2x1
jax: 0.10.0
libtpu: 0.0.40
codegen_flags: <defaults>
</compile_context>

<pallas_src>
import jax
import jax.numpy as jnp
from jax import lax
from jax.experimental import pallas as pl
from jax.experimental.pallas import tpu as pltpu

LANES = 128
SUBLANES = 8
_CHUNK_CANDIDATES = (256, 128, 64, 32, 16, 8)   # in-kernel sub-slab sizes (rows)


def _make_color_loss_kernel(rows, chunk, fold, valid_rows, needs_mask):
    """Build the kernel for one static tiling configuration.

    rows       : spatial rows per grid step (block sublane extent)
    chunk      : rows processed per inner accumulation step (divides rows)
    fold       : sublane extent of the partial-sum output (8 when possible)
    valid_rows : true number of rows R (for masking the ragged last tile)
    needs_mask : whether the last spatial tile overruns R
    """
    n_chunks = rows // chunk

    def kernel(scale_ref, noisy_ref, pred_ref, tgt_ref, out_ref):
        # scale_ref : SMEM (2B,) f32  -- [1/sqrt(acp_t), sqrt(1-acp_t)/sqrt(acp_t)]*B
        # noisy_ref : VMEM (1,3,rows,128) noisy RGB (channel block 0:3)
        # pred_ref  : VMEM (1,3,rows,128) predicted noise
        # tgt_ref   : VMEM (1,4,rows,128) clean target (R,G,B,alpha)
        # out_ref   : VMEM (1,1,fold,128) this step's partial sum of squares
        b = pl.program_id(0)
        s_tile = pl.program_id(1)
        inv_sqrt_a = scale_ref[2 * b]
        coef = scale_ref[2 * b + 1]

        def chunk_partial(r0):
            sl = pl.ds(r0, chunk)
            # Cast in-kernel (bf16 inputs stream at half the HBM bytes); slice
            # the target per channel group BEFORE casting so no 4-channel f32
            # temporary is materialized.
            noisy = noisy_ref[:, :, sl, :].astype(jnp.float32)   # (1,3,chunk,128)
            eps = pred_ref[:, :, sl, :].astype(jnp.float32)      # (1,3,chunk,128)
            rgb = tgt_ref[:, 0:3, sl, :].astype(jnp.float32)     # (1,3,chunk,128)
            alpha = tgt_ref[:, 3:4, sl, :].astype(jnp.float32)   # (1,1,chunk,128)

            # DDPM x0 prediction + alpha-masked squared error.
            pred_x0 = noisy * inv_sqrt_a - eps * coef
            diff = alpha * (pred_x0 - rgb)
            sq = diff * diff                                      # (1,3,chunk,128)

            if needs_mask:
                # Ragged last tile: rows past the true R hold unspecified VMEM
                # data; select-zero them (VPU work, free under HBM roofline).
                row = (s_tile * rows + r0 +
                       lax.broadcasted_iota(jnp.int32, (chunk, LANES), 0))
                sq = jnp.where((row < valid_rows)[None, None], sq, 0.0)

            # Channel sum + sublane-group fold: plain VALU vreg adds, no XLU,
            # no narrow masked stores.
            per_lane = jnp.sum(sq, axis=(0, 1))                   # (chunk,128)
            return per_lane.reshape(chunk // fold, fold, LANES).sum(axis=0)

        if n_chunks == 1:
            out_ref[...] = chunk_partial(0).reshape(1, 1, fold, LANES)
        else:
            def body(c, acc):
                r0 = pl.multiple_of(c * chunk, chunk)
                return acc + chunk_partial(r0)
            acc = lax.fori_loop(0, n_chunks, body,
                                jnp.zeros((fold, LANES), jnp.float32))
            out_ref[...] = acc.reshape(1, 1, fold, LANES)

    return kernel


def _to_rows(x, s, s_pad):
    """[B, C, H, W, D] -> [B, C, s_pad//128, 128].

    Free contiguous reshape when s % 128 == 0 (common power-of-two volumes);
    otherwise a single lane-alignment pad (the zero tail is inert: alpha = 0).
    """
    b, c = x.shape[:2]
    x = x.reshape(b, c, s)
    if s_pad != s:
        x = jnp.pad(x, ((0, 0), (0, 0), (0, s_pad - s)))
    return x.reshape(b, c, s_pad // LANES, LANES)


def color_stage_loss(model_output, noisy_sample, timesteps, target,
                     alphas_cumprod, rgb_weight=1.0, rows_per_tile=2048):
    """Pallas implementation of ColorStageLoss.forward.

    model_output : [B, 3, H, W, D]  predicted noise for RGB channels
    noisy_sample : [B, 4, H, W, D]  current noisy input (clean alpha channel)
    timesteps    : [B]              int timesteps
    target       : [B, 4, H, W, D]  clean sample (R, G, B, alpha)
    alphas_cumprod : [T]            scheduler's cumulative alpha products
    """
    B, _, H, W, D = noisy_sample.shape
    S = H * W * D

    # Lane-align the flattened spatial axis (no-op / free reshape when
    # S % 128 == 0).  No other wrapper-side padding: ragged row tails are
    # masked in-kernel.
    s_pad = pl.cdiv(S, LANES) * LANES
    noisy = _to_rows(noisy_sample, S, s_pad)   # (B,4,R,128) native dtype
    eps = _to_rows(model_output, S, s_pad)     # (B,3,R,128)
    tgt = _to_rows(target, S, s_pad)           # (B,4,R,128)
    R = s_pad // LANES

    # Spatial tile size (rows per grid step).
    rows_cap = max(SUBLANES, (rows_per_tile // SUBLANES) * SUBLANES)
    rows = rows_cap if R > rows_cap else R
    n_tiles = pl.cdiv(R, rows)
    needs_mask = (R % rows) != 0               # ragged last tile -> mask in-kernel

    # In-kernel chunked accumulation keeps f32 intermediates O(chunk) instead
    # of O(rows), which is what lets the big DMA tile fit v7x VMEM.
    chunk = rows
    for cand in _CHUNK_CANDIDATES:
        if cand < rows and rows % cand == 0:
            chunk = cand
            break
    fold = SUBLANES if chunk % SUBLANES == 0 else chunk

    # Per-batch DDPM scalars -> 1-D SMEM scalar-prefetch array (avoids the
    # [B,2] -> [8,128]-word SMEM padding).
    acp_t = alphas_cumprod[timesteps].astype(jnp.float32)
    sqrt_a = jnp.sqrt(acp_t)
    sqrt_b = jnp.sqrt(1.0 - acp_t)
    scale = jnp.stack([1.0 / sqrt_a, sqrt_b / sqrt_a], axis=-1).reshape(-1)  # (2B,)

    kernel = _make_color_loss_kernel(rows, chunk, fold, R, needs_mask)

    grid_spec = pltpu.PrefetchScalarGridSpec(
        num_scalar_prefetch=1,
        grid=(B, n_tiles),
        in_specs=[
            # noisy: size-3 channel block at block index 0 on the 4-channel
            # array -> only RGB is DMA'd, the clean alpha never leaves HBM.
            # (Non-dividing channel block; the index_map only ever returns
            # channel-block 0, which is fully in bounds.)
            pl.BlockSpec((1, 3, rows, LANES), lambda b, s, sc: (b, 0, s, 0)),
            pl.BlockSpec((1, 3, rows, LANES), lambda b, s, sc: (b, 0, s, 0)),
            pl.BlockSpec((1, 4, rows, LANES), lambda b, s, sc: (b, 0, s, 0)),
        ],
        out_specs=pl.BlockSpec((1, 1, fold, LANES),
                               lambda b, s, sc: (b, s, 0, 0)),
    )

    def _isz(a):
        return jnp.dtype(a.dtype).itemsize

    bytes_accessed = (B * n_tiles * rows * LANES *
                      (3 * _isz(noisy) + 3 * _isz(eps) + 4 * _isz(tgt))
                      + B * n_tiles * fold * LANES * 4)
    cost = pl.CostEstimate(flops=8 * B * 3 * s_pad, transcendentals=0,
                           bytes_accessed=bytes_accessed)

    partials = pl.pallas_call(
        kernel,
        out_shape=jax.ShapeDtypeStruct((B, n_tiles, fold, LANES), jnp.float32),
        grid_spec=grid_spec,
        compiler_params=pltpu.CompilerParams(
            dimension_semantics=("parallel", "parallel"),
            vmem_limit_bytes=48 * 1024 * 1024),
        cost_estimate=cost,
    )(scale, noisy, eps, tgt)

    n_elems = B * 3 * S  # MSE mean over all true (unpadded) RGB elements
    return rgb_weight * jnp.sum(partials) / n_elems


def _reference_loss(model_output, noisy_sample, timesteps, target,
                    alphas_cumprod, rgb_weight=1.0):
    acp_t = alphas_cumprod[timesteps].astype(jnp.float32)
    sqrt_a = jnp.sqrt(acp_t).reshape(-1, 1, 1, 1, 1)
    sqrt_b = jnp.sqrt(1.0 - acp_t).reshape(-1, 1, 1, 1, 1)
    pred_original = (noisy_sample[:, :3] - sqrt_b * model_output) / sqrt_a
    true_rgb = target[:, :3]
    alpha_mask = target[:, 3:4]
    rgb_loss = jnp.mean((alpha_mask * pred_original - alpha_mask * true_rgb) ** 2)
    return rgb_weight * rgb_loss


def _make_inputs(key, B, H, W, D):
    k1, k2, k3, k4 = jax.random.split(key, 4)
    model_output = jax.random.normal(k1, (B, 3, H, W, D), dtype=jnp.float32)
    noisy_sample = jax.random.normal(k2, (B, 4, H, W, D), dtype=jnp.float32)
    target_rgb = jax.random.normal(k3, (B, 3, H, W, D), dtype=jnp.float32)
    target_alpha = (jax.random.uniform(k4, (B, 1, H, W, D)) > 0.5).astype(jnp.float32)
    target = jnp.concatenate([target_rgb, target_alpha], axis=1)
    return model_output, noisy_sample, target


if __name__ == "__main__":
    num_train_timesteps = 100
    rgb_weight = 1.0

    # Deterministic DDPM-style scheduler (linear betas).
    betas = jnp.linspace(1e-4, 0.02, num_train_timesteps, dtype=jnp.float32)
    alphas_cumprod = jnp.cumprod(1.0 - betas)

    key = jax.random.PRNGKey(0)
    k_a, k_b = jax.random.split(key)

    # --- main case: R = 16 rows -> exercises the chunked accumulation path ---
    B, H, W, D = 2, 8, 8, 32
    model_output, noisy_sample, target = _make_inputs(k_a, B, H, W, D)
    timesteps = jnp.array([10, 75], dtype=jnp.int32)

    loss = color_stage_loss(model_output, noisy_sample, timesteps, target,
                            alphas_cumprod, rgb_weight)
    loss = jax.block_until_ready(loss)
    ref = _reference_loss(model_output, noisy_sample, timesteps, target,
                          alphas_cumprod, rgb_weight)
    assert jnp.allclose(loss, ref, rtol=1e-5, atol=1e-6), (loss, ref)

    # --- ragged case: R = 12 rows, rows_per_tile=8 -> 2 spatial tiles, the
    #     last one masked in-kernel (no wrapper pad) ---
    B2, H2, W2, D2 = 2, 8, 8, 24
    model_output2, noisy_sample2, target2 = _make_inputs(k_b, B2, H2, W2, D2)
    timesteps2 = jnp.array([3, 90], dtype=jnp.int32)

    loss2 = color_stage_loss(model_output2, noisy_sample2, timesteps2, target2,
                             alphas_cumprod, rgb_weight, rows_per_tile=8)
    loss2 = jax.block_until_ready(loss2)
    ref2 = _reference_loss(model_output2, noisy_sample2, timesteps2, target2,
                           alphas_cumprod, rgb_weight)
    assert jnp.allclose(loss2, ref2, rtol=1e-5, atol=1e-6), (loss2, ref2)

    print("KERNEL_OK")
</pallas_src>

<mosaic_0001>
module attributes {stable_mosaic.version = 11 : i64} {
  func.func @kernel(%arg0: i32, %arg1: i32, %arg2: memref<4xf32, #tpu.memory_space<smem>>, %arg3: memref<1x3x16x128xf32, #tpu.memory_space<vmem>>, %arg4: memref<1x3x16x128xf32, #tpu.memory_space<vmem>>, %arg5: memref<1x4x16x128xf32, #tpu.memory_space<vmem>>, %arg6: memref<1x1x8x128xf32, #tpu.memory_space<vmem>>) attributes {dimension_semantics = [#tpu.dimension_semantics<parallel>, #tpu.dimension_semantics<parallel>], iteration_bounds = array<i64: 2, 1>, scalar_prefetch = 1 : i64, scratch_operands = 0 : i64, tpu.core_type = #tpu.core_type<tc>, window_params = [{transform_indices = @transform_0, window_bounds = array<i64: 1, 3, 16, 128>}, {transform_indices = @transform_1, window_bounds = array<i64: 1, 3, 16, 128>}, {transform_indices = @transform_2, window_bounds = array<i64: 1, 4, 16, 128>}, {transform_indices = @transform_3, window_bounds = array<i64: 1, 1, 8, 128>}]} {
    %c2_i32 = arith.constant 2 : i32
    %0 = arith.muli %c2_i32, %arg0 : i32
    %1 = arith.index_cast %0 : i32 to index
    %2 = memref.load %arg2[%1] : memref<4xf32, #tpu.memory_space<smem>>
    %c2_i32_0 = arith.constant 2 : i32
    %3 = arith.muli %c2_i32_0, %arg0 : i32
    %c1_i32 = arith.constant 1 : i32
    %4 = arith.addi %3, %c1_i32 : i32
    %5 = arith.index_cast %4 : i32 to index
    %6 = memref.load %arg2[%5] : memref<4xf32, #tpu.memory_space<smem>>
    %cst = arith.constant 0.000000e+00 : f32
    %7 = vector.broadcast %cst : f32 to vector<8x128xf32>
    %c0_i32 = arith.constant 0 : i32
    %c2_i32_1 = arith.constant 2 : i32
    %8 = arith.addi %c0_i32, %c2_i32_1 : i32
    %c1_i32_2 = arith.constant 1 : i32
    %9 = scf.for %arg7 = %c0_i32 to %8 step %c1_i32_2 iter_args(%arg8 = %7) -> (vector<8x128xf32>)  : i32 {
      %c8_i32 = arith.constant 8 : i32
      %12 = arith.muli %arg7, %c8_i32 : i32
      %13 = tpu.assume_multiple %12, 8 : i32
      %c0_7 = arith.constant 0 : index
      %c0_8 = arith.constant 0 : index
      %14 = arith.index_cast %13 : i32 to index
      %c0_9 = arith.constant 0 : index
      %15 = vector.load %arg3[%c0_7, %c0_8, %14, %c0_9] : memref<1x3x16x128xf32, #tpu.memory_space<vmem>>, vector<1x3x8x128xf32>
      %c0_10 = arith.constant 0 : index
      %c0_11 = arith.constant 0 : index
      %16 = arith.index_cast %13 : i32 to index
      %c0_12 = arith.constant 0 : index
      %17 = vector.load %arg4[%c0_10, %c0_11, %16, %c0_12] : memref<1x3x16x128xf32, #tpu.memory_space<vmem>>, vector<1x3x8x128xf32>
      %c0_13 = arith.constant 0 : index
      %c0_14 = arith.constant 0 : index
      %18 = arith.index_cast %13 : i32 to index
      %c0_15 = arith.constant 0 : index
      %19 = vector.load %arg5[%c0_13, %c0_14, %18, %c0_15] : memref<1x4x16x128xf32, #tpu.memory_space<vmem>>, vector<1x3x8x128xf32>
      %c0_16 = arith.constant 0 : index
      %c3 = arith.constant 3 : index
      %20 = arith.index_cast %13 : i32 to index
      %c0_17 = arith.constant 0 : index
      %21 = vector.load %arg5[%c0_16, %c3, %20, %c0_17] : memref<1x4x16x128xf32, #tpu.memory_space<vmem>>, vector<1x1x8x128xf32>
      %22 = vector.broadcast %2 : f32 to vector<1x3x8x128xf32>
      %23 = arith.mulf %15, %22 : vector<1x3x8x128xf32>
      %24 = vector.broadcast %6 : f32 to vector<1x3x8x128xf32>
      %25 = arith.mulf %17, %24 : vector<1x3x8x128xf32>
      %26 = arith.subf %23, %25 : vector<1x3x8x128xf32>
      %27 = arith.subf %26, %19 : vector<1x3x8x128xf32>
      %28 = vector.broadcast %21 : vector<1x1x8x128xf32> to vector<1x3x8x128xf32>
      %29 = arith.mulf %28, %27 : vector<1x3x8x128xf32>
      %30 = arith.mulf %29, %29 : vector<1x3x8x128xf32>
      %cst_18 = arith.constant dense<0.000000e+00> : vector<8x128xf32>
      %31 = vector.multi_reduction <add>, %30, %cst_18 [0, 1] : vector<1x3x8x128xf32> to vector<8x128xf32>
      %32 = vector.shape_cast %31 : vector<8x128xf32> to vector<1x8x128xf32>
      %cst_19 = arith.constant dense<0.000000e+00> : vector<8x128xf32>
      %33 = vector.multi_reduction <add>, %32, %cst_19 [0] : vector<1x8x128xf32> to vector<8x128xf32>
      %34 = arith.addf %arg8, %33 : vector<8x128xf32>
      scf.yield %34 : vector<8x128xf32>
    }
    %c2_i32_3 = arith.constant 2 : i32
    %10 = vector.shape_cast %9 : vector<8x128xf32> to vector<1x1x8x128xf32>
    %c0 = arith.constant 0 : index
    %c0_4 = arith.constant 0 : index
    %c0_5 = arith.constant 0 : index
    %c0_6 = arith.constant 0 : index
    %11 = vector.load %arg6[%c0, %c0_4, %c0_5, %c0_6] : memref<1x1x8x128xf32, #tpu.memory_space<vmem>>, vector<1x1x8x128xf32>
    tpu.vector_store %arg6[%c0, %c0_4, %c0_5, %c0_6], %10 {strides = array<i32>} : memref<1x1x8x128xf32, #tpu.memory_space<vmem>>, vector<1x1x8x128xf32>,
    return
  }
  func.func @transform_0(%arg0: i32, %arg1: i32, %arg2: memref<4xf32, #tpu.memory_space<smem>>) -> (i32, i32, i32, i32) {
    %c0_i32 = arith.constant 0 : i32
    %c0_i32_0 = arith.constant 0 : i32
    %c0_i32_1 = arith.constant 0 : i32
    return %arg0, %c0_i32, %arg1, %c0_i32_0 : i32, i32, i32, i32
  }
  func.func @transform_1(%arg0: i32, %arg1: i32, %arg2: memref<4xf32, #tpu.memory_space<smem>>) -> (i32, i32, i32, i32) {
    %c0_i32 = arith.constant 0 : i32
    %c0_i32_0 = arith.constant 0 : i32
    %c0_i32_1 = arith.constant 0 : i32
    return %arg0, %c0_i32, %arg1, %c0_i32_0 : i32, i32, i32, i32
  }
  func.func @transform_2(%arg0: i32, %arg1: i32, %arg2: memref<4xf32, #tpu.memory_space<smem>>) -> (i32, i32, i32, i32) {
    %c0_i32 = arith.constant 0 : i32
    %c0_i32_0 = arith.constant 0 : i32
    %c0_i32_1 = arith.constant 0 : i32
    return %arg0, %c0_i32, %arg1, %c0_i32_0 : i32, i32, i32, i32
  }
  func.func @transform_3(%arg0: i32, %arg1: i32, %arg2: memref<4xf32, #tpu.memory_space<smem>>) -> (i32, i32, i32, i32) {
    %c0_i32 = arith.constant 0 : i32
    %c0_i32_0 = arith.constant 0 : i32
    %c0_i32_1 = arith.constant 0 : i32
    return %arg0, %arg1, %c0_i32, %c0_i32_0 : i32, i32, i32, i32
  }
}

</mosaic_0001>

<bundles_post_ra>
// kernel: tpu_custom_call.1
= control target key start
LH: loop header
LB: loop body
LE: loop exit
PB: predicated region body
PF: predicated region fallthrough
CT: control target
= control target key end

     0   :  { %s1183_s0 = inlined_call_operand.hbm [shape: f32[4], index: 0, kind: input, shape index: {}]   ;;  %s1184_s1 = inlined_call_operand.hbm [shape: f32[2,4,16,128], index: 1, kind: input, shape index: {}]   ;;  %s1185_s2 = inlined_call_operand.hbm [shape: f32[2,3,16,128], index: 2, kind: input, shape index: {}]   ;;  %s1186_s3 = inlined_call_operand.hbm [shape: f32[2,4,16,128], index: 3, kind: input, shape index: {}]   ;;  %s1187_s4 = inlined_call_operand.hbm [shape: f32[2,1,8,128], index: 4, kind: output, shape index: {}]  }
   0x1   :  { %1196 = sst [smem:[#allocation16_spill]] %s1184_s1  ;;  %s633_s17 = scalar_lea.hbm %s1183_s0, 16 }
   0x2   :  { %1197 = sst [smem:[#allocation17_spill]] %s1185_s2  ;;  %p634_p0 = scmp.ne.s32.totalorder %s1183_s0, %s633_s17 }
   0x3   :  { %p637_p1 = scmp.lt.u32.totalorder %s633_s17, %s1183_s0 }
   0x5   :  { %p639_p2 = pnand %p637_p1, %p634_p0 }
   0x7   :  { %642 = shalt.err (!%p639_p2)  }
   0x8   :  { %s839_s22 = smov [#allocation3]  }
   0x9   :  { %10 = dma.hbm_to_smem %s1183_s0, 16, %s839_s22, [#allocation2] }
   0xa   :  { %793 = dma.done.wait [#allocation2], 16 }
   0xb   :  { %794 = vsyncadd [#allocation2], 4294967280 }
   0xc   :  { %12 = sfence }
   0xd   :  { %13 = vsyncpa [#allocation5], 0 }
   0xe   :  { %15 = vsyncpa [#allocation5 + $0x1], 0 }
   0xf   :  { %16 = vsyncpa [#allocation8], 0 }
  0x10   :  { %18 = vsyncpa [#allocation8 + $0x1], 0 }
  0x11   :  { %19 = vsyncpa [#allocation6], 0 }
  0x12   :  { %21 = vsyncpa [#allocation6 + $0x1], 0  ;;  %s883_s25 = smov 0   ;;  %s885_s26 = smov 0  }
  0x13   :  { %s887_s27 = smov 0   ;;  %s889_s28 = smov 0  }
  0x14   :  { %s891_s29 = smov 0   ;;  %s893_s0 = smov 0  }
  0x15 LB: > { %s914_s30 = sadd.s32 4294967295, %s829_s0   ;;  %s516_s5 = sadd.s32 4294967294, %s829_s0   ;;  %s829_s0 = sphi %s893_s0, %s27_s0   ;;  %s825_s29 = sphi %s891_s29, %s1223_s29   ;;  %s821_s28 = sphi %s889_s28, %s1222_s28   ;;  %s817_s27 = sphi %s887_s27, %s1221_s27   ;;  %s813_s26 = sphi %s885_s26, %s1220_s26   ;;  %s809_s25 = sphi %s883_s25, %s1219_s25  }
  0x16   : > { %s39_s6 = sadd.s32 1, %s825_s29  ;;  %s48_s7 = sadd.s32 1, %s817_s27 }
  0x17   : > { %p41_p3 = scmp.ge.s32.totalorder %s39_s6, 2  ;;  %p55_p4 = scmp.ne.s32.totalorder %s817_s27, %s813_s26 }
  0x18   : > { %p56_p5 = scmp.eq.s32.totalorder %s829_s0, 0  ;;  %p61_p6 = scmp.ne.s32.totalorder %s813_s26, %s809_s25 }
  0x19   : > { %s1225_s6 = smov (%p41_p3, %s39_s6), 0  ;;  %p62_p8 = scmp.eq.s32.totalorder %s914_s30, 0 }
  0x1a   : > { %1198 = sst [smem:[#allocation15_spill]] %s1225_s6  ;;  %p926_p7 = por %p56_p5, %p55_p4 }
  0x1b   : > { %s43_s9 = ssub.s32 %s825_s29, %s1225_s6  ;;  %p143_p9 = scmp.eq.s32.totalorder %s914_s30, 1 }
  0x1c   : > { %p46_p10 = scmp.eq.s32.totalorder %s43_s9, 0  ;;  %p934_p11 = por %p62_p8, %p61_p6 }
  0x1d   : > { %p938_p12 = por %p143_p9, %p55_p4  ;;  %p149_p13 = scmp.eq.s32.totalorder %s516_s5, 1 }
  0x1e   : > { %s1200_s10 = scalar_select %p934_p11, 1, 0 }
  0x1f   : > { %s1201_s11 = scalar_select %p938_p12, 1, 0 }
  0x20   : > { %s943_s12 = scalar_select %p46_p10, %s817_s27, %s48_s7  }
  0x21   : > { %p945_p0 = por %p149_p13, %p61_p6  ;;  %p564_p2 = scmp.lt.s32.totalorder %s829_s0, 2 }
  0x22   : > { %s952_s14 = sand.u32 1, %s817_s27   ;;  %s192_s17 = sand.u32 1, %s829_s0  }
  0x23   : > { %s1202_s13 = scalar_select %p945_p0, 1, 0 }
  0x24   : > { %s538_s15 = smul.u32 48, %s952_s14  ;;  %p957_p3 = pnand %p564_p2, %p926_p7 }
  0x25   : > { %s540_s18 = smul.u32 768, %s825_s29  ;;  %s1204_s2 = sld [smem:[#allocation17_spill]] }
  0x26   : > { %s196_s19 = scalar_lea.vmem [#allocation7], %s538_s15  ;;  %s974_s24 = scalar_lea.sflag [#allocation8], %s192_s17 }
  0x27   : > { %s205_s20 = sshll.u32 %s196_s19, 4  ;;  %p980_p7 = pneg %p957_p3  ;;  %s965_s20 = int_to_ptr.vmem [resolvable:$true] %s205_s20 }
  0x2b   : > { %s971_s23 = scalar_lea.hbm %s1204_s2, %s540_s18  ;;  %s648_s18 = scalar_lea.hbm %s1204_s2, 1536 }
  0x2c   : > { %s643_s5 = scalar_lea.hbm %s971_s23, 768  ;;  %p649_p10 = scmp.lt.u32.totalorder %s971_s23, %s1204_s2 }
  0x2d   : > { %p644_p6 = scmp.ne.s32.totalorder %s971_s23, %s643_s5  ;;  %p650_p13 = scmp.lt.u32.totalorder %s648_s18, %s643_s5 }
  0x2e   : > { %p652_p1 = scmp.lt.u32.totalorder %s643_s5, %s971_s23 }
  0x2f   : > { %p646_p8 = pnand %p980_p7, %p644_p6  ;;  %p651_p2 = por %p650_p13, %p649_p10 }
  0x31   : > { %p647_p9 = pneg %p646_p8  ;;  %p653_p4 = por %p652_p1, %p651_p2 }
  0x33   : > { %p654_p5 = pnand %p653_p4, %p647_p9 }
  0x35   : > { %657 = shalt.err (!%p654_p5)
}
  0x36   : > { %s658_s17 = scalar_lea.vmem %s965_s20, 768  ;;  %s840_s22 = smov [#allocation7]  }
  0x37   : > { %p659_p6 = scmp.ne.s32.totalorder %s965_s20, %s658_s17  ;;  %s663_s8 = sshll.u32 %s840_s22, 4  ;;  %s664_s8 = int_to_ptr.vmem [resolvable:$false] %s663_s8 }
  0x38   : > { %s665_s9 = scalar_lea.vmem %s664_s8, 1536  ;;  %p666_p12 = scmp.lt.s32.totalorder %s965_s20, %s664_s8 }
  0x39   : > { %p661_p8 = pnand %p659_p6, %p980_p7  ;;  %p667_p11 = scmp.lt.s32.totalorder %s665_s9, %s658_s17 }
  0x3b   : > { %p662_p0 = pneg %p661_p8  ;;  %p668_p10 = por %p667_p11, %p666_p12 }
  0x3d   : > { %p669_p13 = pnand %p668_p10, %p662_p0 }
  0x3f   : > { %672 = shalt.err (!%p669_p13)
}
  0x40   : > { %s1190_s5 = smov 128   ;;  %s1192_s18 = smov 8  }
  0x41   : > { %556 = dma.hbm_to_vmem [thread:$0]  (!%p957_p3), %s971_s23, 768, %s965_s20, %s974_s24, %s1190_s5, %s1190_s5, %s1192_s18  }
  0x42   : > { %p1206_p11 = scmp.lt.s32.totalorder %s829_s0, 3  ;;  %p1207_p12 = scmp.ge.s32.totalorder %s829_s0, 1 }
  0x43   : > { %s1194_s21 = sshll.u32 %s825_s29, 10  ;;  %s1209_s1 = sld [smem:[#allocation16_spill]] }
  0x44   : > { %p1011_p0 = pnand %p1207_p12, %p1206_p11  ;;  %s173_s9 = scalar_lea.vmem [#allocation4], %s538_s15 }
  0x45   : > { %s182_s20 = sshll.u32 %s173_s9, 4  ;;  %s170_s23 = scalar_lea.sflag [#allocation5], %s952_s14  ;;  %s1025_s20 = int_to_ptr.vmem [resolvable:$true] %s182_s20 }
  0x46   : > { %s1208_s19 = scalar_select %p1011_p0, 1, 0 }
  0x49   : > { %s1021_s8 = scalar_lea.hbm %s1209_s1, %s1194_s21  ;;  %s678_s17 = scalar_lea.hbm %s1209_s1, 2048 }
  0x4a   : > { %s673_s5 = scalar_lea.hbm %s1021_s8, 768  ;;  %p679_p9 = scmp.lt.u32.totalorder %s1021_s8, %s1209_s1 }
  0x4b   : > { %p674_p1 = scmp.ne.s32.totalorder %s1021_s8, %s673_s5  ;;  %p680_p2 = scmp.lt.u32.totalorder %s678_s17, %s673_s5 }
  0x4c   : > { %p682_p8 = scmp.lt.u32.totalorder %s673_s5, %s1021_s8 }
  0x4d   : > { %p676_p4 = pnand %p674_p1, %p980_p7  ;;  %p681_p6 = por %p680_p2, %p679_p9 }
  0x4f   : > { %p677_p5 = pneg %p676_p4  ;;  %p683_p10 = por %p682_p8, %p681_p6 }
  0x51   : > { %p684_p13 = pnand %p683_p10, %p677_p5 }
  0x53   : > { %687 = shalt.err (!%p684_p13)
}
  0x54   : > { %s688_s15 = scalar_lea.vmem %s1025_s20, 768  ;;  %s843_s2 = smov [#allocation4]  }
  0x55   : > { %p689_p11 = scmp.ne.s32.totalorder %s1025_s20, %s688_s15  ;;  %s693_s18 = sshll.u32 %s843_s2, 4  ;;  %s694_s18 = int_to_ptr.vmem [resolvable:$false] %s693_s18 }
  0x56   : > { %s695_s21 = scalar_lea.vmem %s694_s18, 1536  ;;  %p696_p4 = scmp.lt.s32.totalorder %s1025_s20, %s694_s18 }
  0x57   : > { %p691_p12 = pnand %p689_p11, %p980_p7  ;;  %p697_p0 = scmp.lt.s32.totalorder %s695_s21, %s688_s15 }
  0x59   : > { %p692_p1 = pneg %p691_p12  ;;  %p698_p9 = por %p697_p0, %p696_p4 }
  0x5b   : > { %p699_p2 = pnand %p698_p9, %p692_p1 }
  0x5d   : > { %702 = shalt.err (!%p699_p2)
}
  0x5e   : > { %s1210_s5 = smov 8   ;;  %s1211_s9 = smov 128  }
  0x5f   : > { %553 = dma.hbm_to_vmem [thread:$0]  (!%p957_p3), %s1021_s8, 768, %s1025_s20, %s170_s23, %s1211_s9, %s1211_s9, %s1210_s5  }
  0x60   : > { %s522_s17 = sshll.u32 %s952_s14, 6  ;;  %s1212_s22 = sshll.u32 %s825_s29, 10 }
  0x61   : > { %s1060_s18 = scalar_lea.hbm %s1186_s3, %s1212_s22  ;;  %s219_s21 = scalar_lea.vmem [#allocation9], %s522_s17 }
  0x62   : > { %s228_s1 = sshll.u32 %s219_s21, 4  ;;  %s703_s6 = scalar_lea.hbm %s1060_s18, 1024  ;;  %s1062_s1 = int_to_ptr.vmem [resolvable:$true] %s228_s1 }
  0x63   : > { %p704_p0 = scmp.ne.s32.totalorder %s1060_s18, %s703_s6  ;;  %s708_s20 = scalar_lea.hbm %s1186_s3, 2048 }
  0x64   : > { %p709_p8 = scmp.lt.u32.totalorder %s1060_s18, %s1186_s3  ;;  %p710_p10 = scmp.lt.u32.totalorder %s708_s20, %s703_s6 }
  0x65   : > { %p706_p5 = pnand %p704_p0, %p980_p7  ;;  %p712_p11 = scmp.lt.u32.totalorder %s703_s6, %s1060_s18 }
  0x66   : > { %p711_p13 = por %p710_p10, %p709_p8 }
  0x67   : > { %p707_p6 = pneg %p706_p5 }
  0x68   : > { %p713_p12 = por %p712_p11, %p711_p13 }
  0x6a   : > { %p714_p1 = pnand %p713_p12, %p707_p6 }
  0x6c   : > { %717 = shalt.err (!%p714_p1)
}
  0x6d   : > { %s718_s17 = scalar_lea.vmem %s1062_s1, 1024  ;;  %s844_s2 = smov [#allocation9]  }
  0x6e   : > { %p719_p4 = scmp.ne.s32.totalorder %s1062_s1, %s718_s17  ;;  %s723_s15 = sshll.u32 %s844_s2, 4  ;;  %s724_s15 = int_to_ptr.vmem [resolvable:$false] %s723_s15 }
  0x6f   : > { %s725_s21 = scalar_lea.vmem %s724_s15, 2048  ;;  %p726_p0 = scmp.lt.s32.totalorder %s1062_s1, %s724_s15 }
  0x70   : > { %p721_p9 = pnand %p719_p4, %p980_p7  ;;  %p727_p5 = scmp.lt.s32.totalorder %s725_s21, %s718_s17 }
  0x72   : > { %p722_p2 = pneg %p721_p9  ;;  %p728_p8 = por %p727_p5, %p726_p0 }
  0x74   : > { %p729_p10 = pnand %p728_p8, %p722_p2 }
  0x76   : > { %732 = shalt.err (!%p729_p10)
}
  0x77   : > { %559 = dma.hbm_to_vmem [thread:$0]  (!%p957_p3), %s1060_s18, 1024, %s1062_s1, %s974_s24, %s1211_s9, %s1211_s9, %s1210_s5  }
  0x78   : > { %p1213_p7 = scmp.ne.s32.totalorder %s1208_s19, 0 }
  0x79   : > { %s1092_s6 = sand.u32 (!%p1213_p7), 1, %s813_s26   ;;  %p1214_p6 = scmp.ne.s32.totalorder (!%p1213_p7), %s1200_s10, 0 }
  0x7a   : > { %240 = sbr.rel (%p1213_p7) target bundleno = 173 (0xad), region = 32  ;;  %s243_s14 = scalar_lea.sflag (!%p1213_p7), [#allocation5], %s1092_s6 }
  0x7b   : > { %s541_s7 = smul.u32 (!%p1213_p7), 48, %s1092_s6 }
  0x7d   : > { %s1096_s8 = scalar_lea.vmem (!%p1213_p7), [#allocation4], %s541_s7 }
  0x81   : > { %796 = dma.done.wait (%p1214_p6), %s243_s14, 768  }
  0x82   : > { %798 = vsyncadd (%p1214_p6), %s243_s14, 4294966528  ;;  %s251_s1 = sand.u32 1, %s914_s30   ;;  %s1103_s24 = scalar_lea.vmem [#allocation7], %s541_s7 }
  0x83   : > { %s252_s16 = scalar_lea.sflag [#allocation8], %s251_s1 }
  0x84   : > { %800 = dma.done.wait (%p1214_p6), %s252_s16, 1792  }
  0x85   : > { %802 = vsyncadd (%p1214_p6), %s252_s16, 4294965504  ;;  %s528_s19 = sshll.u32 %s821_s28, 1  ;;  %s526_s5 = sshll.u32 %s1092_s6, 6  ;;  %v831_v0 = vmov 0.0  }
  0x86   : > { %s1111_s9 = sld [smem:[#allocation3 + %s528_s19]]  ;;  %s302_s18 = sadd.s32 1, %s528_s19 }
  0x87   : > { %s1113_s20 = sld [smem:[#allocation3 + %s302_s18]]  ;;  %s527_s23 = sshll.u32 %s1092_s6, 3 }
  0x88   : > { %s1116_s30 = scalar_lea.vmem [#allocation9], %s526_s5  ;;  %s1118_s22 = scalar_lea.vmem [#allocation10], %s527_s23 }
  0x89   : > { %s1120_s17 = smov 0  }
  0x8a LB: >> { %s529_s10 = sshll.u32 %s837_s17, 3  ;;  %s309_s17 = sadd.s32 1, %s837_s17   ;;  %s837_s17 = sphi %s1120_s17, %s309_s17   ;;  %v833_v0 = vphi %v831_v0, %v832_v0  }
  0x8b   : >> { %s312_s2 = scalar_lea.vmem %s1096_s8, %s529_s10 [#allocation4]  ;;  %s316_s15 = scalar_lea.vmem %s1103_s24, %s529_s10 [#allocation7] }
  0x8c   : >> { %v327_v1 = vstv %s1111_s9  ;;  %v313_v3 = vld [vmem:[%s312_s2] sm:$0xff]  ;;  %v314_v4 = vld [vmem:[%s312_s2 + $0x10] sm:$0xff]  ;;  %s320_s21 = scalar_lea.vmem %s1116_s30, %s529_s10 [#allocation9]  ;;  %p306_p3 = scmp.ge.s32.totalorder %s309_s17, 2  }
  0x8d   : >> { %v331_v2 = vstv %s1113_s20  ;;  %v315_v5 = vld [vmem:[%s312_s2 + $0x20] sm:$0xff]  ;;  %v318_v7 = vld [vmem:[%s316_s15 + $0x10] sm:$0xff]  ;;  %v328_v9 = vmul.f32 %v327_v1, %v313_v3  ;;  %v329_v10 = vmul.f32 %v327_v1, %v314_v4  ;;  %s533_s7 = sshll.u32 (%p306_p3), %s821_s28, 7  ;;  %s367_s19 = sshll.u32 (%p306_p3), %s1118_s22, 4  ;;  %s368_s19 = int_to_ptr.vmem [resolvable:$true] %s367_s19 }
  0x8e   : >> { %v317_v6 = vld [vmem:[%s316_s15] sm:$0xff]  ;;  %v330_v11 = vmul.f32 %v327_v1, %v315_v5  ;;  %v333_v13 = vmul.f32 %v331_v2, %v318_v7  ;;  %v322_v16 = vld [vmem:[%s320_s21 + $0x10] sm:$0xff]  ;;  %s1139_s16 = scalar_lea.hbm (%p306_p3), %s1187_s4, %s533_s7  ;;  %s353_s5 = scalar_lea.sflag (%p306_p3), [#allocation6], %s1092_s6 }
  0x8f   : >> { %v319_v8 = vld [vmem:[%s316_s15 + $0x20] sm:$0xff]  ;;  %v332_v12 = vmul.f32 %v331_v2, %v317_v6  ;;  %v531_v21 = vld [vmem:[%s320_s21 + $0x30] sm:$0xff]  ;;  %s733_s18 = scalar_lea.vmem (%p306_p3), %s368_s19, 128  ;;  %p1215_p11 = scmp.ne.s32.totalorder (%p306_p3), %s1201_s11, 0 }
  0x90   : >> { %v334_v14 = vmul.f32 %v331_v2, %v319_v8  ;;  %v321_v15 = vld [vmem:[%s320_s21] sm:$0xff]  ;;  %v336_v19 = vsub.f32 %v329_v10, %v333_v13  ;;  %p734_p13 = scmp.ne.s32.totalorder (%p306_p3), %s368_s19, %s733_s18  ;;  %s845_s8 = smov (%p306_p3), [#allocation10]  }
  0x91   : >> { %v323_v17 = vld [vmem:[%s320_s21 + $0x20] sm:$0xff]  ;;  %v335_v18 = vsub.f32 %v328_v9, %v332_v12  ;;  %s737_s24 = sshll.u32 (%p306_p3), %s845_s8, 4  ;;  %s738_s24 = int_to_ptr.vmem [resolvable:$false] %s737_s24 }
  0x92   : >> { %v337_v20 = vsub.f32 %v330_v11, %v334_v14  ;;  %v339_v23 = vsub.f32 %v336_v19, %v322_v16  ;;  %p735_p12 = pnand (%p306_p3), %p734_p13, %p1215_p11  ;;  %s739_s9 = scalar_lea.vmem (%p306_p3), %s738_s24, 256 }
  0x93   : >> { %v338_v22 = vsub.f32 %v335_v18, %v321_v15  ;;  %p740_p4 = scmp.lt.s32.totalorder (%p306_p3), %s368_s19, %s738_s24  ;;  %p741_p9 = scmp.lt.s32.totalorder (%p306_p3), %s739_s9, %s733_s18 }
  0x94   : >> { %v340_v24 = vsub.f32 %v337_v20, %v323_v17  ;;  %v342_v26 = vmul.f32 %v531_v21, %v339_v23  ;;  %p736_p1 = pneg (%p306_p3), %p735_p12 }
  0x95   : >> { %v341_v25 = vmul.f32 %v531_v21, %v338_v22  ;;  %p742_p2 = por (%p306_p3), %p741_p9, %p740_p4 }
  0x96   : >> { %v343_v27 = vmul.f32 %v531_v21, %v340_v24  ;;  %v345_v29 = vmul.f32 %v342_v26, %v342_v26 }
  0x97   : >> { %v344_v28 = vmul.f32 %v341_v25, %v341_v25  ;;  %p743_p0 = pnand (%p306_p3), %p742_p2, %p736_p1 }
  0x98   : >> { %v346_v30 = vmul.f32 %v343_v27, %v343_v27 }
  0x99   : >> { %v347_v31 = vadd.f32 %v345_v29, %v344_v28  ;;  %308 = sbr.rel (!%p306_p3) target bundleno = 138 (0x8a), region = 112 }
  0x9b   : >> { %v348_v32 = vadd.f32 %v347_v31, %v346_v30 }
  0x9d   : >> { %v350_v33 = vadd.f32 %v833_v0, %v348_v32  }
  0x9f   : >> { %v832_v0 = vmov %v350_v33   ;;  %351 = vst [vmem:[%s1118_s22] sm:$0xff] (%p306_p3), %v350_v33 }
  0xa0   : > { %746 = shalt.err (!%p743_p0)
}
  0xa1   : > { %s747_s28 = scalar_lea.hbm %s1139_s16, 128  ;;  %s751_s23 = scalar_lea.hbm %s1187_s4, 256 }
  0xa2   : > { %p748_p5 = scmp.ne.s32.totalorder %s1139_s16, %s747_s28  ;;  %p752_p7 = scmp.lt.u32.totalorder %s1139_s16, %s1187_s4 }
  0xa3   : > { %p753_p6 = scmp.lt.u32.totalorder %s751_s23, %s747_s28  ;;  %p755_p13 = scmp.lt.u32.totalorder %s747_s28, %s1139_s16 }
  0xa4   : > { %p749_p8 = pnand %p748_p5, %p1215_p11 }
  0xa5   : > { %p754_p3 = por %p753_p6, %p752_p7 }
  0xa6   : > { %p750_p10 = pneg %p749_p8 }
  0xa7   : > { %p756_p12 = por %p755_p13, %p754_p3 }
  0xa9   : > { %p757_p1 = pnand %p756_p12, %p750_p10 }
  0xab   : > { %760 = shalt.err (!%p757_p1)
}
  0xac   : > { %548 = dma.vmem_to_hbm [thread:$0]  (%p1215_p11), %s368_s19, 128, %s1139_s16, %s353_s5  }
  0xad PF: > { %s379_s17 = sand.u32 1, %s809_s25   ;;  %p1216_p4 = scmp.ne.s32.totalorder %s1202_s13, 0 }
  0xae   : > { %p1217_p9 = scmp.ge.s32.totalorder %s829_s0, 2  ;;  %s380_s10 = scalar_lea.sflag [#allocation6], %s379_s17 }
  0xb0   : > { %p561_p2 = pnand %p1217_p9, %p1216_p4 }
  0xb2   : > { %804 = dma.done.wait (!%p561_p2), %s380_s10, 128  }
  0xb3   : > { %806 = vsyncadd (!%p561_p2), %s380_s10, 4294967168  ;;  %s27_s0 = sadd.s32 1, %s829_s0   ;;  %s1218_s11 = sld [smem:[#allocation15_spill]] }
  0xb4   : > { %p24_p0 = scmp.ge.s32.totalorder %s27_s0, 4   ;;  %s1219_s25 = smov %s813_s26 }
  0xb5   : > { %s1220_s26 = smov %s817_s27  ;;  %s1221_s27 = smov %s943_s12 }
  0xb6   : > { %s1222_s28 = smov %s825_s29  ;;  %26 = sbr.rel (!%p24_p0) target bundleno = 21 (0x15), region = 123 }
  0xb9   : > { %s1223_s29 = smov %s1218_s11 }
  0xbd   :  { %385 = vsyncpa [#allocation5], 1 }
  0xbe   :  { %387 = vsyncpa [#allocation5 + $0x1], 1 }
  0xbf   :  { %388 = vsyncpa [#allocation8], 1 }
  0xc0   :  { %390 = vsyncpa [#allocation8 + $0x1], 1 }
  0xc1   :  { %391 = vsyncpa [#allocation6], 1 }
  0xc2   :  { %393 = vsyncpa [#allocation6 + $0x1], 1 }

</bundles_post_ra>
